<compile_context>
chip_gen: v6e
topology: v6e:2x2x1
jax: 0.10.0
libtpu: 0.0.40
codegen_flags: <defaults>
</compile_context>

<pallas_src>
import functools

import jax
import jax.numpy as jnp
import numpy as np
from jax.experimental import pallas as pl
from jax.experimental.pallas import tpu as pltpu


_MAX_FUSED_SLAB_BYTES = 4 * 1024 * 1024    # per-batch (C, L) slab limit for fusion
_TARGET_FUSED_BLOCK_BYTES = 4 * 1024 * 1024  # batch-grouped block target
_TARGET_TILE_BYTES = 2 * 1024 * 1024       # L-tile target in the 2-pass fallback
_VMEM_LIMIT_BYTES = 32 * 1024 * 1024       # safe on v5e/v6e (128 MiB) and v7x (64 MiB)


def _largest_divisor_leq(n, cap):
    cap = max(1, min(n, cap))
    for d in range(cap, 0, -1):
        if n % d == 0:
            return d
    return 1


# --------------------- fused kernel: pool + FC + rescale ---------------------
def _se_fused_kernel(x_ref, w1t_ref, w2t_ref, o_ref, *, inv_l):
    """x_ref/o_ref: (Bb, C, L); w1t_ref: (C, Cr); w2t_ref: (Cr, C).

    One HBM read + one HBM write of x; the tiny FCs run per block on the MXU.
    """
    x = x_ref[...].astype(jnp.float32)                       # (Bb, C, L)
    pooled = jnp.sum(x, axis=-1) * inv_l                     # (Bb, C) global mean
    h = jnp.maximum(
        jnp.dot(pooled, w1t_ref[...],
                preferred_element_type=jnp.float32), 0.0)    # (Bb, Cr)
    s = jax.nn.sigmoid(
        jnp.dot(h, w2t_ref[...],
                preferred_element_type=jnp.float32))         # (Bb, C)
    o_ref[...] = (x * s[:, :, None]).astype(o_ref.dtype)


# ------------------ fallback kernel 1: tiled pool + FC -----------------------
def _se_pool_fc_kernel(x_ref, w1_ref, w2_ref, y_ref, acc_ref, *,
                       inv_l, l_total, tl, n_chunks, masked):
    """Accumulate the global-average pool over L tiles; on the last tile run
    the two bias-free Linears + sigmoid and emit the per-channel scale.

    x_ref:   (1, C, TL)   current L tile of one batch element
    w1_ref:  (Cr, C), w2_ref: (C, Cr)
    y_ref:   (1, C, 1)    per-(batch, channel) scale output
    acc_ref: (C, 128) f32 running partial sums (VPU adds only on the hot path)
    """
    lt = pl.program_id(1)

    @pl.when(lt == 0)
    def _():
        acc_ref[...] = jnp.zeros_like(acc_ref)

    x = x_ref[0].astype(jnp.float32)                          # (C, TL)
    if masked:  # zero the out-of-range lanes of a padded last tile
        lane = jax.lax.broadcasted_iota(jnp.int32, x.shape, 1) + lt * tl
        x = jnp.where(lane < l_total, x, 0.0)

    # 128-lane column chunks accumulated with plain VPU adds; no per-step XLU.
    acc = acc_ref[...]
    for i in range(n_chunks):                                 # static unroll
        acc = acc + x[:, i * 128:(i + 1) * 128]
    acc_ref[...] = acc

    @pl.when(lt == pl.num_programs(1) - 1)
    def _():
        # single cross-lane reduce + tiny FCs, once per batch element
        pooled = jnp.sum(acc_ref[...], axis=-1, keepdims=True) * inv_l  # (C, 1)
        h = jnp.maximum(
            jnp.dot(w1_ref[...], pooled,
                    preferred_element_type=jnp.float32), 0.0)           # (Cr, 1)
        s = jax.nn.sigmoid(
            jnp.dot(w2_ref[...], h,
                    preferred_element_type=jnp.float32))                # (C, 1)
        y_ref[0] = s.astype(y_ref.dtype)


# ------------------ fallback kernel 2: scale apply ---------------------------
def _se_apply_kernel(x_ref, y_ref, o_ref):
    """out = x * y, with y (1, C, 1) lane-broadcast over the L tile."""
    x = x_ref[...].astype(jnp.float32)                        # (1, C, TL)
    s = y_ref[...].astype(jnp.float32)                        # (1, C, 1)
    o_ref[...] = (x * s).astype(o_ref.dtype)


# ------------------------------- wrapper -------------------------------------
def se_layer_forward(x, w1, w2, *, force_two_pass=False, l_tile=None):
    """x: (B, C, L); w1: (C//r, C); w2: (C, C//r). Output has x's dtype."""
    B, C, L = x.shape
    Cr = w1.shape[0]
    assert w1.shape == (Cr, C), f"w1 shape {w1.shape} != {(Cr, C)}"
    assert w2.shape == (C, Cr), f"w2 shape {w2.shape} != {(C, Cr)}"

    itemsize = jnp.dtype(x.dtype).itemsize
    slab_bytes = C * L * itemsize
    use_fused = (not force_two_pass) and (slab_bytes <= _MAX_FUSED_SLAB_BYTES
                                          or L < 128)

    # -------------------------- fused single pass ---------------------------
    if use_fused:
        bb_max = max(1, _TARGET_FUSED_BLOCK_BYTES // max(slab_bytes, 1))
        Bb = _largest_divisor_leq(B, bb_max)
        w1_t = w1.astype(jnp.float32).T        # (C, Cr)
        w2_t = w2.astype(jnp.float32).T        # (Cr, C)
        cost = pl.CostEstimate(
            flops=int(2 * B * C * L + 4 * B * C * Cr),
            transcendentals=int(B * C),
            bytes_accessed=int(2 * B * C * L * itemsize + 8 * C * Cr),
        )
        return pl.pallas_call(
            functools.partial(_se_fused_kernel, inv_l=1.0 / L),
            out_shape=jax.ShapeDtypeStruct((B, C, L), x.dtype),
            grid_spec=pltpu.PrefetchScalarGridSpec(
                num_scalar_prefetch=0,
                grid=(B // Bb,),
                in_specs=[
                    pl.BlockSpec((Bb, C, L), lambda b: (b, 0, 0)),
                    pl.BlockSpec((C, Cr), lambda b: (0, 0)),
                    pl.BlockSpec((Cr, C), lambda b: (0, 0)),
                ],
                out_specs=pl.BlockSpec((Bb, C, L), lambda b: (b, 0, 0)),
            ),
            compiler_params=pltpu.CompilerParams(
                dimension_semantics=("parallel",),
                vmem_limit_bytes=_VMEM_LIMIT_BYTES),
            cost_estimate=cost,
        )(x, w1_t, w2_t)

    # -------------------- 2-pass fallback (large slabs) ----------------------
    w1_f = w1.astype(jnp.float32)
    w2_f = w2.astype(jnp.float32)

    if l_tile is None:
        tl = (_TARGET_TILE_BYTES // max(C * itemsize, 1)) // 128 * 128
    else:
        tl = (l_tile // 128) * 128
    tl = max(128, min(tl, max(128, (L // 128) * 128)))   # 128 <= tl <= L (mult of 128)
    n_lt = pl.cdiv(L, tl)
    masked = (L % tl) != 0

    # ---- pass 1: per-(batch, channel) scale (pool + FC + sigmoid) ----
    scale_cost = pl.CostEstimate(
        flops=int(B * C * L + 4 * B * C * Cr),
        transcendentals=int(B * C),
        bytes_accessed=int(B * C * L * itemsize + 8 * C * Cr + 4 * B * C),
    )
    y = pl.pallas_call(
        functools.partial(_se_pool_fc_kernel, inv_l=1.0 / L, l_total=L,
                          tl=tl, n_chunks=tl // 128, masked=masked),
        out_shape=jax.ShapeDtypeStruct((B, C, 1), jnp.float32),
        grid_spec=pltpu.PrefetchScalarGridSpec(
            num_scalar_prefetch=0,
            grid=(B, n_lt),
            in_specs=[
                pl.BlockSpec((1, C, tl), lambda b, lt: (b, 0, lt)),
                pl.BlockSpec((Cr, C), lambda b, lt: (0, 0)),
                pl.BlockSpec((C, Cr), lambda b, lt: (0, 0)),
            ],
            out_specs=pl.BlockSpec((1, C, 1), lambda b, lt: (b, 0, 0)),
            scratch_shapes=[pltpu.VMEM((C, 128), jnp.float32)],
        ),
        compiler_params=pltpu.CompilerParams(
            dimension_semantics=("parallel", "arbitrary"),
            vmem_limit_bytes=_VMEM_LIMIT_BYTES),
        cost_estimate=scale_cost,
    )(x, w1_f, w2_f)

    # ---- pass 2: rescale x, fully parallel over (B, L tiles) ----
    apply_cost = pl.CostEstimate(
        flops=int(B * C * L),
        transcendentals=0,
        bytes_accessed=int(2 * B * C * L * itemsize + 4 * B * C),
    )
    out = pl.pallas_call(
        _se_apply_kernel,
        out_shape=jax.ShapeDtypeStruct((B, C, L), x.dtype),
        grid_spec=pltpu.PrefetchScalarGridSpec(
            num_scalar_prefetch=0,
            grid=(B, n_lt),
            in_specs=[
                pl.BlockSpec((1, C, tl), lambda b, lt: (b, 0, lt)),
                pl.BlockSpec((1, C, 1), lambda b, lt: (b, 0, 0)),
            ],
            out_specs=pl.BlockSpec((1, C, tl), lambda b, lt: (b, 0, lt)),
        ),
        compiler_params=pltpu.CompilerParams(
            dimension_semantics=("parallel", "parallel"),
            vmem_limit_bytes=_VMEM_LIMIT_BYTES),
        cost_estimate=apply_cost,
    )(x, y)
    return out


# --------------------------- pure-JAX reference ------------------------------
def se_reference(x, w1, w2):
    y = jnp.mean(x, axis=-1)                     # (B, C)
    h = jax.nn.relu(y @ w1.T)                    # (B, Cr)
    s = jax.nn.sigmoid(h @ w2.T)                 # (B, C)
    return x * s[:, :, None]


if __name__ == "__main__":
    B, C, reduction = 2, 64, 16
    Cr = C // reduction  # 4

    key = jax.random.PRNGKey(0)
    k1, k2, k3, k4 = jax.random.split(key, 4)
    w1 = (1.0 / jnp.sqrt(C)) * jax.random.normal(k2, (Cr, C), jnp.float32)
    w2 = (1.0 / jnp.sqrt(Cr)) * jax.random.normal(k3, (C, Cr), jnp.float32)

    # ---- test 1: fused single-pass path (small f32 slab, L multiple of 128)
    L1 = 256
    x1 = jax.random.normal(k1, (B, C, L1), jnp.float32)
    out1 = jax.block_until_ready(se_layer_forward(x1, w1, w2))
    ref1 = jax.block_until_ready(se_reference(x1, w1, w2))
    if not np.allclose(np.asarray(out1), np.asarray(ref1), rtol=1e-4, atol=1e-4):
        raise AssertionError("fused-path SELayer output mismatch vs reference")

    # ---- test 2: forced 2-pass path with a ragged L (masked last tile)
    L2 = 200
    x2 = jax.random.normal(k4, (B, C, L2), jnp.float32)
    out2 = jax.block_until_ready(
        se_layer_forward(x2, w1, w2, force_two_pass=True, l_tile=128))
    ref2 = jax.block_until_ready(se_reference(x2, w1, w2))
    if not np.allclose(np.asarray(out2), np.asarray(ref2), rtol=1e-4, atol=1e-4):
        raise AssertionError("two-pass SELayer output mismatch vs reference")

    # ---- test 3: bf16 I/O through the fused path (dtype preserved)
    x3 = x1.astype(jnp.bfloat16)
    out3 = jax.block_until_ready(se_layer_forward(x3, w1, w2))
    assert out3.dtype == jnp.bfloat16
    ref3 = jax.block_until_ready(se_reference(x3.astype(jnp.float32), w1, w2))
    if not np.allclose(np.asarray(out3, dtype=np.float32), np.asarray(ref3),
                       rtol=5e-2, atol=5e-2):
        raise AssertionError("bf16 SELayer output mismatch vs reference")

    print("KERNEL_OK")
</pallas_src>

<mosaic_0001>
module attributes {stable_mosaic.version = 11 : i64} {
  func.func @_se_fused_kernel(%arg0: i32, %arg1: memref<2x64x256xf32, #tpu.memory_space<vmem>>, %arg2: memref<64x4xf32, #tpu.memory_space<vmem>>, %arg3: memref<4x64xf32, #tpu.memory_space<vmem>>, %arg4: memref<2x64x256xf32, #tpu.memory_space<vmem>>) attributes {dimension_semantics = [#tpu.dimension_semantics<parallel>], iteration_bounds = array<i64: 1>, scalar_prefetch = 0 : i64, scratch_operands = 0 : i64, tpu.core_type = #tpu.core_type<tc>, window_params = [{transform_indices = @transform_0, window_bounds = array<i64: 2, 64, 256>}, {pipeline_mode = #tpu.pipeline_mode<synchronous>, transform_indices = @transform_1, window_bounds = array<i64: 64, 4>}, {pipeline_mode = #tpu.pipeline_mode<synchronous>, transform_indices = @transform_2, window_bounds = array<i64: 4, 64>}, {transform_indices = @transform_3, window_bounds = array<i64: 2, 64, 256>}]} {
    %c0 = arith.constant 0 : index
    %c0_0 = arith.constant 0 : index
    %c0_1 = arith.constant 0 : index
    %0 = vector.load %arg1[%c0, %c0_0, %c0_1] : memref<2x64x256xf32, #tpu.memory_space<vmem>>, vector<2x64x256xf32>
    %cst = arith.constant dense<0.000000e+00> : vector<2x64xf32>
    %1 = vector.multi_reduction <add>, %0, %cst [2] : vector<2x64x256xf32> to vector<2x64xf32>
    %cst_2 = arith.constant 3.906250e-03 : f32
    %2 = vector.broadcast %cst_2 : f32 to vector<2x64xf32>
    %3 = arith.mulf %1, %2 : vector<2x64xf32>
    %c0_3 = arith.constant 0 : index
    %c0_4 = arith.constant 0 : index
    %4 = vector.load %arg2[%c0_3, %c0_4] : memref<64x4xf32, #tpu.memory_space<vmem>>, vector<64x4xf32>
    %cst_5 = arith.constant dense<0.000000e+00> : vector<2x4xf32>
    %5 = tpu.matmul %3, %4, %cst_5 {dimension_numbers = #tpu.dot_dimension_numbers<[1], [0], [0], [1], [0, 0, 1, 1], [], []>} : vector<2x64xf32>, vector<64x4xf32>, vector<2x4xf32> -> vector<2x4xf32>
    %cst_6 = arith.constant 0.000000e+00 : f32
    %6 = vector.broadcast %cst_6 : f32 to vector<2x4xf32>
    %7 = arith.maximumf %5, %6 : vector<2x4xf32>
    %c0_7 = arith.constant 0 : index
    %c0_8 = arith.constant 0 : index
    %8 = vector.load %arg3[%c0_7, %c0_8] : memref<4x64xf32, #tpu.memory_space<vmem>>, vector<4x64xf32>
    %cst_9 = arith.constant dense<0.000000e+00> : vector<2x64xf32>
    %9 = tpu.matmul %7, %8, %cst_9 {dimension_numbers = #tpu.dot_dimension_numbers<[1], [0], [0], [1], [0, 0, 1, 1], [], []>} : vector<2x4xf32>, vector<4x64xf32>, vector<2x64xf32> -> vector<2x64xf32>
    %10 = arith.negf %9 : vector<2x64xf32>
    %11 = math.exp %10 : vector<2x64xf32>
    %cst_10 = arith.constant 1.000000e+00 : f32
    %12 = vector.broadcast %cst_10 : f32 to vector<2x64xf32>
    %13 = arith.addf %12, %11 : vector<2x64xf32>
    %14 = arith.divf %12, %13 : vector<2x64xf32>
    %15 = vector.shape_cast %14 : vector<2x64xf32> to vector<2x64x1xf32>
    %16 = vector.broadcast %15 : vector<2x64x1xf32> to vector<2x64x256xf32>
    %17 = arith.mulf %0, %16 : vector<2x64x256xf32>
    %c0_11 = arith.constant 0 : index
    %c0_12 = arith.constant 0 : index
    %c0_13 = arith.constant 0 : index
    %18 = vector.load %arg4[%c0_11, %c0_12, %c0_13] : memref<2x64x256xf32, #tpu.memory_space<vmem>>, vector<2x64x256xf32>
    tpu.vector_store %arg4[%c0_11, %c0_12, %c0_13], %17 {strides = array<i32>} : memref<2x64x256xf32, #tpu.memory_space<vmem>>, vector<2x64x256xf32>,
    return
  }
  func.func @transform_0(%arg0: i32) -> (i32, i32, i32) {
    %c0_i32 = arith.constant 0 : i32
    %c0_i32_0 = arith.constant 0 : i32
    %c0_i32_1 = arith.constant 0 : i32
    return %arg0, %c0_i32, %c0_i32_0 : i32, i32, i32
  }
  func.func @transform_1(%arg0: i32) -> (i32, i32) {
    %c0_i32 = arith.constant 0 : i32
    %c0_i32_0 = arith.constant 0 : i32
    %c0_i32_1 = arith.constant 0 : i32
    return %c0_i32, %c0_i32_0 : i32, i32
  }
  func.func @transform_2(%arg0: i32) -> (i32, i32) {
    %c0_i32 = arith.constant 0 : i32
    %c0_i32_0 = arith.constant 0 : i32
    %c0_i32_1 = arith.constant 0 : i32
    return %c0_i32, %c0_i32_0 : i32, i32
  }
  func.func @transform_3(%arg0: i32) -> (i32, i32, i32) {
    %c0_i32 = arith.constant 0 : i32
    %c0_i32_0 = arith.constant 0 : i32
    %c0_i32_1 = arith.constant 0 : i32
    return %arg0, %c0_i32, %c0_i32_0 : i32, i32, i32
  }
}

</mosaic_0001>

<bundles_post_ra>
// kernel: tpu_custom_call.1
= control target key start
LH: loop header
LB: loop body
LE: loop exit
PB: predicated region body
PF: predicated region fallthrough
CT: control target
= control target key end

     0   :  { %8 = vsyncpa [#allocation3], 0  ;;  %s865_s0 = inlined_call_operand.hbm [shape: f32[2,64,256], index: 0, kind: input, shape index: {}]   ;;  %s866_s1 = inlined_call_operand.vmem [shape: f32[64,4], index: 1, kind: input, shape index: {}]   ;;  %s867_s2 = inlined_call_operand.vmem [shape: f32[4,64], index: 2, kind: input, shape index: {}]   ;;  %s868_s3 = inlined_call_operand.hbm [shape: f32[2,64,256], index: 3, kind: output, shape index: {}]  }
   0x1   :  { %9 = vsyncpa [#allocation4], 0  ;;  %s648_s12 = smov [#allocation2]  }
   0x2   :  { %s15_s13 = sshll.u32 %s648_s12, 4  ;;  %s16_s13 = int_to_ptr.vmem [resolvable:$true] %s15_s13 }
   0x3   :  { %s612_s14 = scalar_lea.vmem %s16_s13, 4096  ;;  %p617_p1 = scmp.lt.s32.totalorder %s16_s13, %s16_s13 }
   0x4   :  { %p613_p0 = scmp.ne.s32.totalorder %s16_s13, %s612_s14  ;;  %p618_p2 = scmp.lt.s32.totalorder %s612_s14, %s612_s14 }
   0x6   :  { %p619_p3 = por %p618_p2, %p617_p1 }
   0x8   :  { %p620_p4 = pnand %p619_p3, %p613_p0 }
   0xa   :  { %623 = shalt.err (!%p620_p4)
}
   0xb   :  { %s649_s15 = smov 256   ;;  %s650_s16 = smov 16  }
   0xc   :  { %21 = dma.hbm_to_vmem [thread:$0]  %s865_s0, 4096, %s16_s13, [#allocation3], %s649_s15, %s649_s15, %s650_s16  }
   0xd   :  { %644 = dma.done.wait [#allocation3], 4096  }
   0xe   :  { %645 = vsyncadd [#allocation3], 4294963200  ;;  %v680_v0 = vld [vmem:[#allocation2 + $0x80] sm:$0xff]  ;;  %v682_v1 = vld [vmem:[#allocation2 + $0x88] sm:$0xff]  ;;  %v651_v48 = vmov 0.0   ;;  %vm652_vm0 = vmmov 0   ;;  %v149_v61 = vlaneseq }
   0xf   :  { %v684_v2 = vld [vmem:[#allocation2] sm:$0xff]  ;;  %v85_v3 = vadd.f32 %v682_v1, %v680_v0  ;;  %v688_v4 = vld [vmem:[#allocation2 + $0x8] sm:$0xff]  ;;  %v690_v5 = vld [vmem:[#allocation2 + $0x90] sm:$0xff]  ;;  %570 = vmatprep.subr.mxu0 %v651_v48  ;;  %589 = vmatprep.subr.mxu1 %v651_v48  ;;  %vm160_vm1 = vcmask 130112   ;;  %vm167_vm2 = vcmask 195712   ;;  %vm174_vm3 = vcmask 261312  }
  0x10   :  { %v692_v6 = vld [vmem:[#allocation2 + $0x98] sm:$0xff]  ;;  %v61_v7 = vadd.f32 %v688_v4, %v684_v2  ;;  %v696_v8 = vld [vmem:[#allocation2 + $0x10] sm:$0xff]  ;;  %v704_v12 = vld [vmem:[#allocation2 + $0xa0] sm:$0xff]  ;;  %586 = vmatprep.mubr.msk.f32.mxu0 %vm652_vm0, %v651_v48  ;;  %591 = vmatprep.mubr.msk.f32.mxu1 %vm652_vm0, %v651_v48  ;;  %vm181_vm4 = vcmask 326912   ;;  %vm188_vm5 = vcmask 392512   ;;  %vm195_vm6 = vcmask 458112  }
  0x11   :  { %v698_v9 = vld [vmem:[#allocation2 + $0x18] sm:$0xff]  ;;  %86 = vadd.xlane.f32.xlu1 %v85_v3  ;;  %v88_v10 = vadd.f32 %v692_v6, %v690_v5  ;;  %v706_v13 = vld [vmem:[#allocation2 + $0xa8] sm:$0xff]  ;;  %v708_v14 = vld [vmem:[#allocation2 + $0x20] sm:$0xff]  ;;  %v150_v3 = vand.u32 127, %v149_v61  ;;  %vm202_vm7 = vcmask 523712   ;;  %vm243_vm8 = vcmask 1041409  }
  0x12   :  { %62 = vadd.xlane.f32.xlu0 %v61_v7  ;;  %v64_v11 = vadd.f32 %v698_v9, %v696_v8  ;;  %v710_v15 = vld [vmem:[#allocation2 + $0x28] sm:$0xff]  ;;  %v91_v16 = vadd.f32 %v706_v13, %v704_v12  ;;  %v716_v18 = vld [vmem:[#allocation2 + $0xb0] sm:$0xff]  ;;  %v718_v19 = vld [vmem:[#allocation2 + $0xb8] sm:$0xff]  ;;  %vm245_vm9 = vcmask 523264   ;;  %vm324_vm10 = vcmask 1043456  }
  0x13   :  { %v67_v17 = vadd.f32 %v710_v15, %v708_v14  ;;  %876 = vst [vmem:[#allocation8_spill] sm:$0xff] %v718_v19  ;;  %v720_v20 = vld [vmem:[#allocation2 + $0x30] sm:$0xff]  ;;  %v722_v21 = vld [vmem:[#allocation2 + $0x38] sm:$0xff]  ;;  %v94_v22 = vadd.f32 %v718_v19, %v716_v18  ;;  %v728_v24 = vld [vmem:[#allocation2 + $0xc0] sm:$0xff]  ;;  %vm320_vm11 = vcmask 31744  }
  0x14   :  { %v70_v23 = vadd.f32 %v722_v21, %v720_v20  ;;  %v730_v25 = vld [vmem:[#allocation2 + $0xc8] sm:$0xff]  ;;  %v732_v26 = vld [vmem:[#allocation2 + $0x40] sm:$0xff]  ;;  %v740_v30 = vld [vmem:[#allocation2 + $0xd0] sm:$0xff] }
  0x15   :  { %89 = vadd.xlane.f32.xlu1 %v88_v10  ;;  %v734_v27 = vld [vmem:[#allocation2 + $0x48] sm:$0xff]  ;;  %v97_v28 = vadd.f32 %v730_v25, %v728_v24  ;;  %877 = vst [vmem:[#allocation9_spill] sm:$0xff] %v740_v30  ;;  %v742_v31 = vld [vmem:[#allocation2 + $0xd8] sm:$0xff]  ;;  %v744_v32 = vld [vmem:[#allocation2 + $0x50] sm:$0xff]  ;;  %v800_v10 = vshrl.u32 %v149_v61, 7 }
  0x16   :  { %65 = vadd.xlane.f32.xlu0 %v64_v11  ;;  %v73_v29 = vadd.f32 %v734_v27, %v732_v26  ;;  %878 = vst [vmem:[#allocation10_spill] sm:$0xff] %v742_v31  ;;  %v746_v33 = vld [vmem:[#allocation2 + $0x58] sm:$0xff]  ;;  %v100_v34 = vadd.f32 %v742_v31, %v740_v30  ;;  %v752_v36 = vld [vmem:[#allocation2 + $0xe0] sm:$0xff]  ;;  %v754_v37 = vld [vmem:[#allocation2 + $0xe8] sm:$0xff] }
  0x17   :  { %v76_v35 = vadd.f32 %v746_v33, %v744_v32  ;;  %879 = vst [vmem:[#allocation11_spill] sm:$0xff] %v752_v36  ;;  %880 = vst [vmem:[#allocation12_spill] sm:$0xff] %v754_v37  ;;  %v756_v38 = vld [vmem:[#allocation2 + $0x60] sm:$0xff]  ;;  %v758_v39 = vld [vmem:[#allocation2 + $0x68] sm:$0xff]  ;;  %v103_v40 = vadd.f32 %v754_v37, %v752_v36 }
  0x18   :  { %v79_v41 = vadd.f32 %v758_v39, %v756_v38  ;;  %v764_v42 = vld [vmem:[#allocation2 + $0xf0] sm:$0xff]  ;;  %v766_v43 = vld [vmem:[#allocation2 + $0xf8] sm:$0xff]  ;;  %v130_v51 = vld [vmem:[%s866_s1 + $0x28] sm:$0xff] }
  0x19   :  { %92 = vadd.xlane.f32.xlu1 %v91_v16  ;;  %881 = vst [vmem:[#allocation13_spill] sm:$0xff] %v764_v42  ;;  %882 = vst [vmem:[#allocation14_spill] sm:$0xff] %v766_v43  ;;  %v768_v44 = vld [vmem:[#allocation2 + $0x70] sm:$0xff]  ;;  %v770_v45 = vld [vmem:[#allocation2 + $0x78] sm:$0xff]  ;;  %v106_v46 = vadd.f32 %v766_v43, %v764_v42  ;;  %v155_v16 = vadd.s32 4294967288, %v150_v3 }
  0x1a   :  { %68 = vadd.xlane.f32.xlu0 %v67_v17  ;;  %v82_v47 = vadd.f32 %v770_v45, %v768_v44  ;;  %v132_v49 = vld [vmem:[%s866_s1 + $0x38] sm:$0xff]  ;;  %v131_v50 = vld [vmem:[%s866_s1 + $0x30] sm:$0xff]  ;;  %v129_v52 = vld [vmem:[%s866_s1 + $0x20] sm:$0xff]  ;;  %v162_v17 = vadd.s32 4294967280, %v150_v3 }
  0x1b   :  { %571 = vmatpush3.msra.mxu0 %v132_v49  ;;  %v128_v53 = vld [vmem:[%s866_s1 + $0x18] sm:$0xff]  ;;  %v127_v54 = vld [vmem:[%s866_s1 + $0x10] sm:$0xff]  ;;  %v126_v55 = vld [vmem:[%s866_s1 + $0x8] sm:$0xff] }
  0x1c   :  { %572 = vmatprep.subr.mxu0 %v651_v48  ;;  %v125_v56 = vld [vmem:[%s866_s1] sm:$0xff] }
  0x1d   :  { %95 = vadd.xlane.f32.xlu1 %v94_v22  ;;  %573 = vmatpush3.msra.mxu0 %v131_v50  ;;  %v169_v22 = vadd.s32 4294967272, %v150_v3 }
  0x1e   :  { %71 = vadd.xlane.f32.xlu0 %v70_v23  ;;  %574 = vmatprep.subr.mxu0 %v651_v48  ;;  %v176_v23 = vadd.s32 4294967264, %v150_v3 }
  0x1f   :  { %575 = vmatpush3.msra.mxu0 %v130_v51 }
  0x20   :  { %576 = vmatprep.subr.mxu0 %v651_v48  ;;  %v179_v49 = vsub.s32 %v176_v23, %v800_v10  ;;  %v197_v23 = vadd.s32 4294967240, %v150_v3 }
  0x21   :  { %98 = vadd.xlane.f32.xlu1 %v97_v28  ;;  %577 = vmatpush3.msra.mxu0 %v129_v52 }
  0x22   :  { %74 = vadd.xlane.f32.xlu0 %v73_v29  ;;  %578 = vmatprep.subr.mxu0 %v651_v48  ;;  %v183_v29 = vadd.s32 4294967256, %v150_v3 }
  0x23   :  { %579 = vmatpush3.msra.mxu0 %v128_v53 }
  0x24   :  { %580 = vmatprep.subr.mxu0 %v651_v48  ;;  %v186_v52 = vsub.s32 %v183_v29, %v800_v10 }
  0x25   :  { %101 = vadd.xlane.f32.xlu1 %v100_v34  ;;  %581 = vmatpush3.msra.mxu0 %v127_v54  ;;  %v153_v34 = vsub.s32 %v150_v3, %v800_v10 }
  0x26   :  { %77 = vadd.xlane.f32.xlu0 %v76_v35  ;;  %582 = vmatprep.subr.mxu0 %v651_v48 }
  0x27   :  { %583 = vmatpush3.msra.mxu0 %v126_v55 }
  0x28   :  { %584 = vmatprep.subr.mxu0 %v651_v48  ;;  %v172_v48 = vsub.s32 %v169_v22, %v800_v10 }
  0x29   :  { %104 = vadd.xlane.f32.xlu1 %v103_v40  ;;  %585 = vmatpush3.msra.mxu0 %v125_v56  ;;  %v158_v40 = vsub.s32 %v155_v16, %v800_v10 }
  0x2a   :  { %80 = vadd.xlane.f32.xlu0 %v79_v41  ;;  %v165_v41 = vsub.s32 %v162_v17, %v800_v10 }
  0x2d   :  { %107 = vadd.xlane.f32.xlu1 %v106_v46  ;;  %v190_v46 = vadd.s32 4294967248, %v150_v3  ;;  %v200_v3 = vsub.s32 %v197_v23, %v800_v10 }
  0x2e   :  { %83 = vadd.xlane.f32.xlu0 %v82_v47 }
  0x9a   :  { %v87_v57 = vpop.xlane.xlu1 %86 }
  0x9b   :  { %v63_v58 = vpop.xlane.xlu0 %62  ;;  %v117_v54 = vmul.f32 0.00390625, %v87_v57 }
  0x9c   :  { %v109_v16 = vmul.f32 0.00390625, %v63_v58 }
  0x9d   :  { %v207_v37 = vrot.slane %v117_v54, %v153_v34 }
  0x9e   :  { %v90_v59 = vpop.xlane.xlu1 %89  ;;  %v154_v19 = vrot.slane %v109_v16, %v153_v34 }
  0x9f   :  { %v66_v60 = vpop.xlane.xlu0 %65  ;;  %v118_v47 = vmul.f32 0.00390625, %v90_v59  ;;  %v193_v59 = vsub.s32 %v190_v46, %v800_v10 }
  0xa0   :  { %v110_v50 = vmul.f32 0.00390625, %v66_v60 }
  0xa1   :  { %v211_v22 = vrot.slane %v118_v47, %v158_v40 }
  0xa2   :  { %v93_v62 = vpop.xlane.xlu1 %92  ;;  %v159_v60 = vrot.slane %v110_v50, %v158_v40 }
  0xa3   :  { %v69_v63 = vpop.xlane.xlu0 %68  ;;  %v119_v51 = vmul.f32 0.00390625, %v93_v62  ;;  %v212_v46 = vsel %vm160_vm1, %v211_v22, %v207_v37  ;;  %v319_v22 = vld [vmem:[%s867_s2] sm:$0xf]  ;;  %s653_s2 = smov [#allocation5]  }
  0xa4   :  { %v111_v55 = vmul.f32 0.00390625, %v69_v63  ;;  %v161_v40 = vsel %vm160_vm1, %v159_v60, %v154_v19  ;;  %590 = vmatpush3.msk.msra.mxu1 %vm324_vm10, %v319_v22  ;;  %s543_s8 = sshll.u32 %s653_s2, 4  ;;  %s544_s8 = int_to_ptr.vmem [resolvable:$true] %s543_s8 }
  0xa5   :  { %v216_v62 = vrot.slane %v119_v51, %v165_v41  ;;  %s624_s9 = scalar_lea.vmem %s544_s8, 4096  ;;  %p629_p6 = scmp.lt.s32.totalorder %s544_s8, %s544_s8 }
  0xa6   :  { %v96_v7 = vpop.xlane.xlu1 %95  ;;  %v166_v57 = vrot.slane %v111_v55, %v165_v41  ;;  %p625_p5 = scmp.ne.s32.totalorder %s544_s8, %s624_s9  ;;  %p630_p7 = scmp.lt.s32.totalorder %s624_s9, %s624_s9 }
  0xa7   :  { %v72_v11 = vpop.xlane.xlu0 %71  ;;  %v120_v56 = vmul.f32 0.00390625, %v96_v7  ;;  %v217_v50 = vsel %vm167_vm2, %v216_v62, %v212_v46 }
  0xa8   :  { %v112_v17 = vmul.f32 0.00390625, %v72_v11  ;;  %v168_v54 = vsel %vm167_vm2, %v166_v57, %v161_v40  ;;  %p631_p8 = por %p630_p7, %p629_p6 }
  0xa9   :  { %v221_v63 = vrot.slane %v120_v56, %v172_v48 }
  0xaa   :  { %v99_v28 = vpop.xlane.xlu1 %98  ;;  %v173_v58 = vrot.slane %v112_v17, %v172_v48  ;;  %p632_p9 = pnand %p631_p8, %p625_p5 }
  0xab   :  { %v75_v35 = vpop.xlane.xlu0 %74  ;;  %v121_v43 = vmul.f32 0.00390625, %v99_v28  ;;  %v222_v34 = vsel %vm174_vm3, %v221_v63, %v217_v50 }
  0xac   :  { %v113_v42 = vmul.f32 0.00390625, %v75_v35  ;;  %v175_v37 = vsel %vm174_vm3, %v173_v58, %v168_v54 }
  0xad   :  { %v226_v11 = vrot.slane %v121_v43, %v179_v49 }
  0xae   :  { %v102_v53 = vpop.xlane.xlu1 %101  ;;  %v180_v47 = vrot.slane %v113_v42, %v179_v49 }
  0xaf   :  { %v78_v61 = vpop.xlane.xlu0 %77  ;;  %v122_v31 = vmul.f32 0.00390625, %v102_v53 }
  0xb0   :  { %v114_v30 = vmul.f32 0.00390625, %v78_v61  ;;  %v182_v19 = vsel %vm181_vm4, %v180_v47, %v175_v37  ;;  %v441_v47 = vsub.s32 1, %v800_v10 }
  0xb1   :  { %v231_v35 = vrot.slane %v122_v31, %v186_v52  ;;  %v227_v31 = vsel %vm181_vm4, %v226_v11, %v222_v34  ;;  %v406_v11 = vsub.s32 0, %v800_v10 }
  0xb2   :  { %v105_v29 = vpop.xlane.xlu1 %104  ;;  %v187_v51 = vrot.slane %v114_v30, %v186_v52 }
  0xb3   :  { %v123_v7 = vmul.f32 0.00390625, %v105_v29  ;;  %v81_v36 = vpop.xlane.xlu0 %80  ;;  %v232_v49 = vsel %vm188_vm5, %v231_v35, %v227_v31 }
  0xb4   :  { %v115_v28 = vmul.f32 0.00390625, %v81_v36  ;;  %v189_v52 = vsel %vm188_vm5, %v187_v51, %v182_v19 }
  0xb5   :  { %v236_v53 = vrot.slane %v123_v7, %v193_v59 }
  0xb6   :  { %v108_v41 = vpop.xlane.xlu1 %107  ;;  %v194_v48 = vrot.slane %v115_v28, %v193_v59 }
  0xb7   :  { %v124_v43 = vmul.f32 0.00390625, %v108_v41  ;;  %v84_v36 = vpop.xlane.xlu0 %83  ;;  %v237_v55 = vsel %vm195_vm6, %v236_v53, %v232_v49 }
  0xb8   :  { %v116_v42 = vmul.f32 0.00390625, %v84_v36  ;;  %v196_v61 = vsel %vm195_vm6, %v194_v48, %v189_v52 }
  0xb9   :  { %v241_v30 = vrot.slane %v124_v43, %v200_v3 }
  0xba   :  { %v201_v56 = vrot.slane %v116_v42, %v200_v3 }
  0xbb   :  { %v242_v16 = vsel %vm202_vm7, %v241_v30, %v237_v55  ;;  %v883_v55 = vld [vmem:[#allocation8_spill] sm:$0xff] }
  0xbc   :  { %v203_v17 = vsel %vm202_vm7, %v201_v56, %v196_v61  ;;  %v884_v61 = vld [vmem:[#allocation11_spill] sm:$0xff] }
  0xbd   :  { %v244_v59 = vsel %vm243_vm8, %v242_v16, %v203_v17  ;;  %v885_v17 = vld [vmem:[#allocation12_spill] sm:$0xff] }
  0xbe   :  { %587 = vmatmul.mubr.msk.f32.vlgmr.msra.gmra.mxu0 %vm245_vm9, %v244_v59  ;;  %v887_v59 = vld [vmem:[#allocation10_spill] sm:$0xff] }
 0x17e   :  { %v314_v23 = vpop.f32.mrf.mxu0 }
 0x17f   :  { %v318_v60 = vmax.f32 %v314_v23, 0.0  ;;  %v888_v23 = vld [vmem:[#allocation13_spill] sm:$0xff] }
 0x180   :  { %v588_v62 = vpop.f32.mrf.mxu0 }
 0x181   :  { %592 = vmatmul.mubr.msk.f32.vlgmr.msra.gmra.mxu1 %vm320_vm11, %v318_v60  ;;  %v889_v62 = vld [vmem:[#allocation14_spill] sm:$0xff] }
 0x241   :  { %v394_v29 = vpop.f32.mrf.mxu1 }
 0x242   :  { %v558_v57 = vmul.f32 -1.442695, %v394_v29 }
 0x243   :  { %v593_v63 = vpop.f32.mrf.mxu1 }
 0x244   :  { %600 = vpow2.f32 %v558_v57 }
 0x251   :  { %v601_v7 = vpop.eup %600 }
 0x252   :  { %v401_v58 = vadd.f32 1.0, %v601_v7 }
 0x254   :  { %602 = vrcp.f32 %v401_v58 }
 0x261   :  { %v603_v28 = vpop.eup %602 }
 0x262   :  { %v407_v46 = vrot.slane %v603_v28, %v406_v11  ;;  %v442_v35 = vrot.slane %v603_v28, %v441_v47 }
 0x264   :  { %413 = vbcast.lane.b32.xlu1 %v407_v46, 264  ;;  %409 = vbcast.lane.b32.xlu0 %v407_v46, 256 }
 0x268   :  { %417 = vbcast.lane.b32.xlu1 %v407_v46, 272  ;;  %425 = vbcast.lane.b32.xlu0 %v407_v46, 288 }
 0x26c   :  { %421 = vbcast.lane.b32.xlu1 %v407_v46, 280  ;;  %433 = vbcast.lane.b32.xlu0 %v407_v46, 304 }
 0x270   :  { %429 = vbcast.lane.b32.xlu1 %v407_v46, 296  ;;  %444 = vbcast.lane.b32.xlu0 %v442_v35, 256 }
 0x274   :  { %437 = vbcast.lane.b32.xlu1 %v407_v46, 312  ;;  %452 = vbcast.lane.b32.xlu0 %v442_v35, 272 }
 0x278   :  { %448 = vbcast.lane.b32.xlu1 %v442_v35, 264  ;;  %460 = vbcast.lane.b32.xlu0 %v442_v35, 288 }
 0x27c   :  { %456 = vbcast.lane.b32.xlu1 %v442_v35, 280  ;;  %468 = vbcast.lane.b32.xlu0 %v442_v35, 304 }
 0x280   :  { %464 = vbcast.lane.b32.xlu1 %v442_v35, 296 }
 0x284   :  { %472 = vbcast.lane.b32.xlu1 %v442_v35, 312 }
 0x2d6   :  { %v414_v3 = vpop.permute.xlu1 %413  ;;  %v410_v40 = vpop.permute.xlu0 %409 }
 0x2d7   :  { %v476_v50 = vmul.f32 %v414_v3, %v696_v8  ;;  %v477_v51 = vmul.f32 %v414_v3, %v698_v9  ;;  %v474_v10 = vmul.f32 %v410_v40, %v684_v2  ;;  %v475_v53 = vmul.f32 %v410_v40, %v688_v4 }
 0x2d9   :  { %508 = vst [vmem:[#allocation5 + $0x10] sm:$0xff] %v476_v50  ;;  %509 = vst [vmem:[#allocation5 + $0x18] sm:$0xff] %v477_v51 }
 0x2da   :  { %506 = vst [vmem:[#allocation5] sm:$0xff] %v474_v10  ;;  %507 = vst [vmem:[#allocation5 + $0x8] sm:$0xff] %v475_v53  ;;  %v418_v41 = vpop.permute.xlu1 %417  ;;  %v426_v54 = vpop.permute.xlu0 %425 }
 0x2db   :  { %v478_v34 = vmul.f32 %v418_v41, %v708_v14  ;;  %v479_v48 = vmul.f32 %v418_v41, %v710_v15  ;;  %v482_v43 = vmul.f32 %v426_v54, %v732_v26  ;;  %v483_v8 = vmul.f32 %v426_v54, %v734_v27 }
 0x2dd   :  { %510 = vst [vmem:[#allocation5 + $0x20] sm:$0xff] %v478_v34  ;;  %511 = vst [vmem:[#allocation5 + $0x28] sm:$0xff] %v479_v48 }
 0x2de   :  { %514 = vst [vmem:[#allocation5 + $0x40] sm:$0xff] %v482_v43  ;;  %515 = vst [vmem:[#allocation5 + $0x48] sm:$0xff] %v483_v8  ;;  %v422_v2 = vpop.permute.xlu1 %421  ;;  %v434_v4 = vpop.permute.xlu0 %433 }
 0x2df   :  { %v480_v9 = vmul.f32 %v422_v2, %v720_v20  ;;  %v481_v36 = vmul.f32 %v422_v2, %v722_v21  ;;  %v486_v37 = vmul.f32 %v434_v4, %v756_v38  ;;  %v487_v14 = vmul.f32 %v434_v4, %v758_v39 }
 0x2e1   :  { %512 = vst [vmem:[#allocation5 + $0x30] sm:$0xff] %v480_v9  ;;  %513 = vst [vmem:[#allocation5 + $0x38] sm:$0xff] %v481_v36 }
 0x2e2   :  { %518 = vst [vmem:[#allocation5 + $0x60] sm:$0xff] %v486_v37  ;;  %519 = vst [vmem:[#allocation5 + $0x68] sm:$0xff] %v487_v14  ;;  %v430_v15 = vpop.permute.xlu1 %429  ;;  %v445_v26 = vpop.permute.xlu0 %444 }
 0x2e3   :  { %v484_v27 = vmul.f32 %v430_v15, %v744_v32  ;;  %v485_v31 = vmul.f32 %v430_v15, %v746_v33  ;;  %v490_v42 = vmul.f32 %v445_v26, %v680_v0  ;;  %v491_v20 = vmul.f32 %v445_v26, %v682_v1 }
 0x2e5   :  { %516 = vst [vmem:[#allocation5 + $0x50] sm:$0xff] %v484_v27  ;;  %517 = vst [vmem:[#allocation5 + $0x58] sm:$0xff] %v485_v31 }
 0x2e6   :  { %522 = vst [vmem:[#allocation5 + $0x80] sm:$0xff] %v490_v42  ;;  %523 = vst [vmem:[#allocation5 + $0x88] sm:$0xff] %v491_v20  ;;  %v438_v21 = vpop.permute.xlu1 %437  ;;  %v453_v38 = vpop.permute.xlu0 %452 }
 0x2e7   :  { %v488_v39 = vmul.f32 %v438_v21, %v768_v44  ;;  %v489_v19 = vmul.f32 %v438_v21, %v770_v45  ;;  %v494_v49 = vmul.f32 %v453_v38, %v704_v12  ;;  %v495_v32 = vmul.f32 %v453_v38, %v706_v13 }
 0x2e9   :  { %520 = vst [vmem:[#allocation5 + $0x70] sm:$0xff] %v488_v39  ;;  %521 = vst [vmem:[#allocation5 + $0x78] sm:$0xff] %v489_v19 }
 0x2ea   :  { %526 = vst [vmem:[#allocation5 + $0xa0] sm:$0xff] %v494_v49  ;;  %527 = vst [vmem:[#allocation5 + $0xa8] sm:$0xff] %v495_v32  ;;  %v449_v0 = vpop.permute.xlu1 %448  ;;  %v461_v1 = vpop.permute.xlu0 %460 }
 0x2eb   :  { %v492_v33 = vmul.f32 %v449_v0, %v690_v5  ;;  %v493_v30 = vmul.f32 %v449_v0, %v692_v6  ;;  %v498_v52 = vmul.f32 %v461_v1, %v728_v24  ;;  %v499_v44 = vmul.f32 %v461_v1, %v730_v25  ;;  %v886_v24 = vld [vmem:[#allocation9_spill] sm:$0xff] }
 0x2ed   :  { %524 = vst [vmem:[#allocation5 + $0x90] sm:$0xff] %v492_v33  ;;  %525 = vst [vmem:[#allocation5 + $0x98] sm:$0xff] %v493_v30 }
 0x2ee   :  { %530 = vst [vmem:[#allocation5 + $0xc0] sm:$0xff] %v498_v52  ;;  %531 = vst [vmem:[#allocation5 + $0xc8] sm:$0xff] %v499_v44  ;;  %v457_v12 = vpop.permute.xlu1 %456  ;;  %v469_v13 = vpop.permute.xlu0 %468 }
 0x2ef   :  { %v496_v45 = vmul.f32 %v457_v12, %v716_v18  ;;  %v497_v56 = vmul.f32 %v457_v12, %v883_v55  ;;  %v502_v16 = vmul.f32 %v469_v13, %v884_v61  ;;  %v503_v5 = vmul.f32 %v469_v13, %v885_v17 }
 0x2f1   :  { %528 = vst [vmem:[#allocation5 + $0xb0] sm:$0xff] %v496_v45  ;;  %529 = vst [vmem:[#allocation5 + $0xb8] sm:$0xff] %v497_v56 }
 0x2f2   :  { %534 = vst [vmem:[#allocation5 + $0xe0] sm:$0xff] %v502_v16  ;;  %535 = vst [vmem:[#allocation5 + $0xe8] sm:$0xff] %v503_v5  ;;  %v465_v6 = vpop.permute.xlu1 %464 }
 0x2f3   :  { %v500_v25 = vmul.f32 %v465_v6, %v886_v24  ;;  %v501_v22 = vmul.f32 %v465_v6, %v887_v59 }
 0x2f5   :  { %532 = vst [vmem:[#allocation5 + $0xd0] sm:$0xff] %v500_v25  ;;  %533 = vst [vmem:[#allocation5 + $0xd8] sm:$0xff] %v501_v22 }
 0x2f6   :  { %v473_v18 = vpop.permute.xlu1 %472 }
 0x2f7   :  { %v504_v60 = vmul.f32 %v473_v18, %v888_v23  ;;  %v505_v29 = vmul.f32 %v473_v18, %v889_v62 }
 0x2f9   :  { %536 = vst [vmem:[#allocation5 + $0xf0] sm:$0xff] %v504_v60  ;;  %537 = vst [vmem:[#allocation5 + $0xf8] sm:$0xff] %v505_v29 }
 0x2fa   :  { %635 = shalt.err (!%p632_p9)
}
 0x2fb   :  { %549 = dma.vmem_to_hbm [thread:$0]  %s544_s8, 4096, %s868_s3, [#allocation4], %s649_s15, %s649_s15, %s650_s16  }
 0x2fc   :  { %646 = dma.done.wait [#allocation4], 4096  }
 0x2fd   :  { %647 = vsyncadd [#allocation4], 4294963200 }
 0x2fe   :  { %553 = vsyncpa [#allocation3], 1 }
 0x2ff   :  { %554 = vsyncpa [#allocation4], 1 }

</bundles_post_ra>
